<compile_context>
chip_gen: v5e
topology: v5e:2x2
jax: 0.10.0
libtpu: 0.0.40
codegen_flags: <defaults>
</compile_context>

<pallas_src>
import jax
import jax.numpy as jnp
from jax import lax
from jax.experimental import pallas as pl
from jax.experimental.pallas import tpu as pltpu


def _make_kernel(N, K, c_in, Tp, c_out, T_out, bb):
    CT = c_in * Tp
    OT = c_out * T_out

    def kernel(x_ref, adj_ref, bmat_ref, bias_ref, o_ref):
        # x_ref   : (bb, N, c_in*Tp)            VMEM (pre-permuted, zero-padded input)
        # adj_ref : (bb, N, N)                  VMEM
        # bmat_ref: (K, c_in*Tp, c_out*T_out)   VMEM (resident: constant index_map)
        # bias_ref: (1, c_out*T_out)            VMEM (resident)
        # o_ref   : (bb, N, c_out*T_out)        VMEM

        # Chebyshev recurrence applied to the features (no L_k, no eye, k=0 is free).
        ys = [[] for _ in range(K)]          # ys[k][b] : [N, c_in*Tp]
        for b in range(bb):
            X = x_ref[b]                      # [N, c_in*Tp]
            adj = adj_ref[b]                  # [N, N]
            y_prev2 = X
            y_prev1 = jnp.dot(adj, X, preferred_element_type=jnp.float32)
            ys[0].append(y_prev2)
            ys[1].append(y_prev1)
            for k in range(2, K):
                y_k = (2.0 * jnp.dot(adj, y_prev1, preferred_element_type=jnp.float32)
                       - y_prev2)
                ys[k].append(y_k)
                y_prev2, y_prev1 = y_prev1, y_k

        # Weight (and temporal-tap) contraction as K MXU matmuls, batched over the
        # whole batch block via sublane stacking. Output slab is lane-dense.
        acc = None
        for k in range(K):
            yk = ys[k][0] if bb == 1 else jnp.concatenate(ys[k], axis=0)  # [bb*N, CT]
            contrib = jnp.dot(yk, bmat_ref[k], preferred_element_type=jnp.float32)
            acc = contrib if acc is None else acc + contrib               # [bb*N, OT]
        out = acc + bias_ref[...]                                         # bcast [1, OT]

        for b in range(bb):
            o_ref[b] = out[b * N:(b + 1) * N, :]

    return kernel


def t_cheby_conv_ds(x, adj, weight, bias, K, Kt, *, batch_block=1):
    """x: [B, c_in, N, T], adj: [B, N, N], weight: [c_out, K*c_in, 1, Kt], bias: [c_out]."""
    B, c_in, N, T = x.shape
    c_out = weight.shape[0]
    assert K >= 2, "module always stacks L0 and L1, so K >= 2"
    assert weight.shape == (c_out, K * c_in, 1, Kt)
    bb = batch_block
    assert B % bb == 0, "batch_block must divide batch"

    pad = 1
    Tp = T + 2 * pad
    T_out = Tp - Kt + 1

    x = x.astype(jnp.float32)
    adj = adj.astype(jnp.float32)
    w = weight.astype(jnp.float32)
    bias = bias.astype(jnp.float32)

    # Zero temporal padding commutes with the (linear) graph conv, so pad up front.
    # Layout plumbing (wrapper-side): x_perm[b, n, c*Tp + t] = x_pad[b, c, n, t].
    x_pad = jnp.pad(x, ((0, 0), (0, 0), (0, 0), (pad, pad)))
    x_perm = jnp.transpose(x_pad, (0, 2, 1, 3)).reshape(B, N, c_in * Tp)

    # Toeplitz-expanded conv weight (built once, outside the kernel):
    #   B_k[c*Tp + tp, o*T_out + t] = W[o, c*K + k, 0, tp - t]  if 0 <= tp-t < Kt else 0
    w4 = w.reshape(c_out, c_in, K, Kt)                        # ch = c*K + k  ->  (c, k)
    kt = jnp.arange(Tp)[:, None] - jnp.arange(T_out)[None, :]  # [Tp, T_out]
    valid = (kt >= 0) & (kt < Kt)
    kt_c = jnp.clip(kt, 0, Kt - 1)
    blk = w4[:, :, :, kt_c]                                    # [c_out, c_in, K, Tp, T_out]
    blk = jnp.where(valid[None, None, None], blk, 0.0)
    bmat = jnp.transpose(blk, (2, 1, 3, 0, 4)).reshape(K, c_in * Tp, c_out * T_out)

    # bias laid out to match the lane-dense output slab: [1, c_out*T_out]
    bias_row = jnp.broadcast_to(bias[:, None], (c_out, T_out)).reshape(1, c_out * T_out)

    kernel = _make_kernel(N, K, c_in, Tp, c_out, T_out, bb)

    out_perm = pl.pallas_call(
        kernel,
        out_shape=jax.ShapeDtypeStruct((B, N, c_out * T_out), jnp.float32),
        grid=(B // bb,),
        in_specs=[
            pl.BlockSpec((bb, N, c_in * Tp), lambda i: (i, 0, 0)),
            pl.BlockSpec((bb, N, N), lambda i: (i, 0, 0)),
            pl.BlockSpec((K, c_in * Tp, c_out * T_out), lambda i: (0, 0, 0)),  # resident
            pl.BlockSpec((1, c_out * T_out), lambda i: (0, 0)),                # resident
        ],
        out_specs=pl.BlockSpec((bb, N, c_out * T_out), lambda i: (i, 0, 0)),
        compiler_params=pltpu.CompilerParams(dimension_semantics=("parallel",)),
    )(x_perm, adj, bmat, bias_row)

    # [B, N, c_out*T_out] -> [B, c_out, N, T_out]
    return jnp.transpose(out_perm.reshape(B, N, c_out, T_out), (0, 2, 1, 3))


def reference(x, adj, weight, bias, K, Kt):
    """Pure-JAX re-implementation of the PyTorch forward, for validation."""
    B, c_in, N, T = x.shape
    eye = jnp.eye(N, dtype=x.dtype)
    Ls = [jnp.broadcast_to(eye, (B, N, N)), adj]
    for _ in range(2, K):
        Ls.append(2.0 * jnp.matmul(adj, Ls[-1]) - Ls[-2])
    Lap = jnp.stack(Ls, 1)                         # [B, K, N, N]
    Lap = jnp.swapaxes(Lap, -1, -2)
    xg = jnp.einsum('bcnl,bknq->bckql', x, Lap)    # [B, c_in, K, N, T]
    xg = xg.reshape(B, -1, N, T)
    out = lax.conv_general_dilated(
        xg, weight, window_strides=(1, 1), padding=((0, 0), (1, 1)),
        dimension_numbers=('NCHW', 'OIHW', 'NCHW'))
    return out + bias.reshape(1, -1, 1, 1)


if __name__ == "__main__":
    B, c_in, N, T = 2, 4, 16, 16
    K, Kt, c_out = 3, 3, 8

    key = jax.random.PRNGKey(0)
    k1, k2, k3, k4 = jax.random.split(key, 4)
    x = jax.random.normal(k1, (B, c_in, N, T), dtype=jnp.float32)
    adj = jax.random.normal(k2, (B, N, N), dtype=jnp.float32) * (1.0 / N)
    # Conv2d(K*c_in, c_out, kernel_size=(1, Kt)) parameters, deterministic init.
    weight = jax.random.normal(k3, (c_out, K * c_in, 1, Kt), dtype=jnp.float32) * 0.1
    bias = jax.random.normal(k4, (c_out,), dtype=jnp.float32) * 0.1

    ref = reference(x, adj, weight, bias, K, Kt)

    # batch_block=1 -> grid=(2,): both v7x TensorCores get work.
    out = jax.block_until_ready(t_cheby_conv_ds(x, adj, weight, bias, K, Kt, batch_block=1))
    assert out.shape == ref.shape == (B, c_out, N, T), (out.shape, ref.shape)
    err = float(jnp.max(jnp.abs(out - ref)))
    assert jnp.allclose(out, ref, rtol=1e-3, atol=1e-3), f"bb=1 max abs err = {err}"

    # Exercise the batch-blocked path too (sublane-stacked weight matmuls).
    out2 = jax.block_until_ready(t_cheby_conv_ds(x, adj, weight, bias, K, Kt, batch_block=2))
    err2 = float(jnp.max(jnp.abs(out2 - ref)))
    assert jnp.allclose(out2, ref, rtol=1e-3, atol=1e-3), f"bb=2 max abs err = {err2}"

    print("KERNEL_OK")
</pallas_src>

<mosaic_0001>
module attributes {stable_mosaic.version = 11 : i64} {
  func.func @kernel(%arg0: i32, %arg1: memref<1x16x72xf32, #tpu.memory_space<vmem>>, %arg2: memref<1x16x16xf32, #tpu.memory_space<vmem>>, %arg3: memref<3x72x128xf32, #tpu.memory_space<vmem>>, %arg4: memref<1x128xf32, #tpu.memory_space<vmem>>, %arg5: memref<1x16x128xf32, #tpu.memory_space<vmem>>) attributes {dimension_semantics = [#tpu.dimension_semantics<parallel>], iteration_bounds = array<i64: 2>, scalar_prefetch = 0 : i64, scratch_operands = 0 : i64, tpu.core_type = #tpu.core_type<tc>, window_params = [{transform_indices = @transform_0, window_bounds = array<i64: 1, 16, 72>}, {transform_indices = @transform_1, window_bounds = array<i64: 1, 16, 16>}, {pipeline_mode = #tpu.pipeline_mode<synchronous>, transform_indices = @transform_2, window_bounds = array<i64: 3, 72, 128>}, {pipeline_mode = #tpu.pipeline_mode<synchronous>, transform_indices = @transform_3, window_bounds = array<i64: 1, 128>}, {transform_indices = @transform_4, window_bounds = array<i64: 1, 16, 128>}]} {
    %c0 = arith.constant 0 : index
    %c0_0 = arith.constant 0 : index
    %c0_1 = arith.constant 0 : index
    %0 = vector.load %arg1[%c0, %c0_0, %c0_1] : memref<1x16x72xf32, #tpu.memory_space<vmem>>, vector<1x16x72xf32>
    %1 = vector.shape_cast %0 : vector<1x16x72xf32> to vector<16x72xf32>
    %c0_2 = arith.constant 0 : index
    %c0_3 = arith.constant 0 : index
    %c0_4 = arith.constant 0 : index
    %2 = vector.load %arg2[%c0_2, %c0_3, %c0_4] : memref<1x16x16xf32, #tpu.memory_space<vmem>>, vector<1x16x16xf32>
    %3 = vector.shape_cast %2 : vector<1x16x16xf32> to vector<16x16xf32>
    %cst = arith.constant dense<0.000000e+00> : vector<16x72xf32>
    %4 = tpu.matmul %3, %1, %cst {dimension_numbers = #tpu.dot_dimension_numbers<[1], [0], [0], [1], [0, 0, 1, 1], [], []>} : vector<16x16xf32>, vector<16x72xf32>, vector<16x72xf32> -> vector<16x72xf32>
    %cst_5 = arith.constant dense<0.000000e+00> : vector<16x72xf32>
    %5 = tpu.matmul %3, %4, %cst_5 {dimension_numbers = #tpu.dot_dimension_numbers<[1], [0], [0], [1], [0, 0, 1, 1], [], []>} : vector<16x16xf32>, vector<16x72xf32>, vector<16x72xf32> -> vector<16x72xf32>
    %cst_6 = arith.constant 2.000000e+00 : f32
    %6 = vector.broadcast %cst_6 : f32 to vector<16x72xf32>
    %7 = arith.mulf %6, %5 : vector<16x72xf32>
    %8 = arith.subf %7, %1 : vector<16x72xf32>
    %c0_7 = arith.constant 0 : index
    %c0_8 = arith.constant 0 : index
    %c0_9 = arith.constant 0 : index
    %9 = vector.load %arg3[%c0_7, %c0_8, %c0_9] : memref<3x72x128xf32, #tpu.memory_space<vmem>>, vector<1x72x128xf32>
    %10 = vector.shape_cast %9 : vector<1x72x128xf32> to vector<72x128xf32>
    %cst_10 = arith.constant dense<0.000000e+00> : vector<16x128xf32>
    %11 = tpu.matmul %1, %10, %cst_10 {dimension_numbers = #tpu.dot_dimension_numbers<[1], [0], [0], [1], [0, 0, 1, 1], [], []>} : vector<16x72xf32>, vector<72x128xf32>, vector<16x128xf32> -> vector<16x128xf32>
    %c1 = arith.constant 1 : index
    %c0_11 = arith.constant 0 : index
    %c0_12 = arith.constant 0 : index
    %12 = vector.load %arg3[%c1, %c0_11, %c0_12] : memref<3x72x128xf32, #tpu.memory_space<vmem>>, vector<1x72x128xf32>
    %13 = vector.shape_cast %12 : vector<1x72x128xf32> to vector<72x128xf32>
    %cst_13 = arith.constant dense<0.000000e+00> : vector<16x128xf32>
    %14 = tpu.matmul %4, %13, %cst_13 {dimension_numbers = #tpu.dot_dimension_numbers<[1], [0], [0], [1], [0, 0, 1, 1], [], []>} : vector<16x72xf32>, vector<72x128xf32>, vector<16x128xf32> -> vector<16x128xf32>
    %15 = arith.addf %11, %14 : vector<16x128xf32>
    %c2 = arith.constant 2 : index
    %c0_14 = arith.constant 0 : index
    %c0_15 = arith.constant 0 : index
    %16 = vector.load %arg3[%c2, %c0_14, %c0_15] : memref<3x72x128xf32, #tpu.memory_space<vmem>>, vector<1x72x128xf32>
    %17 = vector.shape_cast %16 : vector<1x72x128xf32> to vector<72x128xf32>
    %cst_16 = arith.constant dense<0.000000e+00> : vector<16x128xf32>
    %18 = tpu.matmul %8, %17, %cst_16 {dimension_numbers = #tpu.dot_dimension_numbers<[1], [0], [0], [1], [0, 0, 1, 1], [], []>} : vector<16x72xf32>, vector<72x128xf32>, vector<16x128xf32> -> vector<16x128xf32>
    %19 = arith.addf %15, %18 : vector<16x128xf32>
    %c0_17 = arith.constant 0 : index
    %c0_18 = arith.constant 0 : index
    %20 = vector.load %arg4[%c0_17, %c0_18] : memref<1x128xf32, #tpu.memory_space<vmem>>, vector<1x128xf32>
    %21 = vector.broadcast %20 : vector<1x128xf32> to vector<16x128xf32>
    %22 = arith.addf %19, %21 : vector<16x128xf32>
    %c0_19 = arith.constant 0 : index
    %c0_20 = arith.constant 0 : index
    %c0_21 = arith.constant 0 : index
    %23 = vector.load %arg5[%c0_19, %c0_20, %c0_21] : memref<1x16x128xf32, #tpu.memory_space<vmem>>, vector<1x16x128xf32>
    %24 = vector.shape_cast %23 : vector<1x16x128xf32> to vector<16x128xf32>
    %25 = vector.shape_cast %22 : vector<16x128xf32> to vector<1x16x128xf32>
    tpu.vector_store %arg5[%c0_19, %c0_20, %c0_21], %25 {strides = array<i32>} : memref<1x16x128xf32, #tpu.memory_space<vmem>>, vector<1x16x128xf32>,
    return
  }
  func.func @transform_0(%arg0: i32) -> (i32, i32, i32) {
    %c0_i32 = arith.constant 0 : i32
    %c0_i32_0 = arith.constant 0 : i32
    %c0_i32_1 = arith.constant 0 : i32
    return %arg0, %c0_i32, %c0_i32_0 : i32, i32, i32
  }
  func.func @transform_1(%arg0: i32) -> (i32, i32, i32) {
    %c0_i32 = arith.constant 0 : i32
    %c0_i32_0 = arith.constant 0 : i32
    %c0_i32_1 = arith.constant 0 : i32
    return %arg0, %c0_i32, %c0_i32_0 : i32, i32, i32
  }
  func.func @transform_2(%arg0: i32) -> (i32, i32, i32) {
    %c0_i32 = arith.constant 0 : i32
    %c0_i32_0 = arith.constant 0 : i32
    %c0_i32_1 = arith.constant 0 : i32
    %c0_i32_2 = arith.constant 0 : i32
    return %c0_i32, %c0_i32_0, %c0_i32_1 : i32, i32, i32
  }
  func.func @transform_3(%arg0: i32) -> (i32, i32) {
    %c0_i32 = arith.constant 0 : i32
    %c0_i32_0 = arith.constant 0 : i32
    %c0_i32_1 = arith.constant 0 : i32
    return %c0_i32, %c0_i32_0 : i32, i32
  }
  func.func @transform_4(%arg0: i32) -> (i32, i32, i32) {
    %c0_i32 = arith.constant 0 : i32
    %c0_i32_0 = arith.constant 0 : i32
    %c0_i32_1 = arith.constant 0 : i32
    return %arg0, %c0_i32, %c0_i32_0 : i32, i32, i32
  }
}

</mosaic_0001>

<bundles_post_ra>
// kernel: tpu_custom_call.1
= control target key start
LH: loop header
LB: loop body
LE: loop exit
PB: predicated region body
PF: predicated region fallthrough
CT: control target
= control target key end

     0   :  { %s1093_s0 = inlined_call_operand.hbm [shape: f32[2,16,72], index: 0, kind: input, shape index: {}]   ;;  %s1094_s1 = inlined_call_operand.hbm [shape: f32[2,16,16], index: 1, kind: input, shape index: {}]   ;;  %s1095_s2 = inlined_call_operand.hbm [shape: f32[3,72,128], index: 2, kind: input, shape index: {}]   ;;  %s1096_s3 = inlined_call_operand.vmem [shape: f32[1,128], index: 3, kind: input, shape index: {}]   ;;  %s1097_s4 = inlined_call_operand.hbm [shape: f32[2,16,128], index: 4, kind: output, shape index: {}]  }
   0x1   :  { %1102 = sst [smem:[#allocation13_spill]] %s1093_s0 }
   0x2   :  { %1103 = sst [smem:[#allocation14_spill]] %s1095_s2 }
   0x3   :  { %9 = vsyncpa [#allocation3], 0 }
   0x4   :  { %11 = vsyncpa [#allocation3 + $0x1], 0 }
   0x5   :  { %12 = vsyncpa [#allocation6], 0 }
   0x6   :  { %14 = vsyncpa [#allocation6 + $0x1], 0 }
   0x7   :  { %15 = vsyncpa [#allocation4], 0 }
   0x8   :  { %17 = vsyncpa [#allocation4 + $0x1], 0  ;;  %s890_s15 = smov 0   ;;  %s892_s16 = smov 0  }
   0x9   :  { %s894_s17 = smov 0   ;;  %s896_s18 = smov 0  }
   0xa LB: > { %s911_s19 = sadd.s32 4294967295, %s858_s18   ;;  %s585_s20 = sadd.s32 4294967294, %s858_s18   ;;  %s858_s18 = sphi %s896_s18, %s1117_s18   ;;  %s854_s17 = sphi %s894_s17, %s1116_s17   ;;  %s850_s16 = sphi %s892_s16, %s1115_s16   ;;  %s846_s15 = sphi %s890_s15, %s1114_s15  }
   0xb   : > { %p43_p0 = scmp.ne.s32.totalorder %s850_s16, %s846_s15  ;;  %p44_p1 = scmp.eq.s32.totalorder %s911_s19, 0 }
   0xc   : > { %p135_p2 = scmp.eq.s32.totalorder %s911_s19, 1  ;;  %p141_p3 = scmp.eq.s32.totalorder %s585_s20, 1 }
   0xd   : > { %p920_p4 = por %p44_p1, %p43_p0  ;;  %p586_p5 = scmp.ge.s32.totalorder %s858_s18, 1 }
   0xe   : > { %p925_p6 = por %p141_p3, %p43_p0  ;;  %p148_p7 = scmp.lt.s32.totalorder %s858_s18, 3 }
   0xf   : > { %s1106_s2 = sld [smem:[#allocation14_spill]]  ;;  %s860_s27 = smov [#allocation7]  }
  0x10   : > { %p933_p8 = pnand %p586_p5, %p148_p7  ;;  %s161_s28 = sshll.u32 %s860_s27, 4  ;;  %s162_s28 = int_to_ptr.vmem [resolvable:$true] %s161_s28 }
  0x11   : > { %s943_s29 = sadd.s32 1, %s858_s18   ;;  %s1098_s30 = smov 128  }
  0x12   : > { %p637_p9 = pneg %p933_p8  ;;  %s1100_s5 = smov 8  }
  0x13   : > { %s27_s6 = ssub.s32 %s858_s18, %s943_s29  ;;  %s30_s7 = sadd.s32 1, %s854_s17 }
  0x14   : > { %p638_p10 = pnand %p637_p9, %p44_p1  ;;  %p28_p12 = scmp.eq.s32.totalorder %s27_s6, 0 }
  0x15   : > { %s159_s25 = sshll.u32 %s1106_s2, 4  ;;  %p37_p13 = scmp.ne.s32.totalorder %s854_s17, %s850_s16  ;;  %s160_s25 = int_to_ptr.hbm [resolvable:$true] %s159_s25 }
  0x16   : > { %640 = dma.hbm_to_vmem [thread:$0]  (!%p638_p10), %s160_s25, 3456, %s162_s28, [#allocation6], %s1098_s30, %s1098_s30, %s1100_s5  }
  0x17   : > { %p38_p0 = scmp.eq.s32.totalorder %s858_s18, 0  ;;  %p653_p3 = scmp.lt.s32.totalorder %s858_s18, 2 }
  0x18   : > { %s956_s8 = scalar_select %p28_p12, %s854_s17, %s30_s7  }
  0x19   : > { %p39_p5 = por %p38_p0, %p37_p13  ;;  %p960_p7 = por %p135_p2, %p37_p13 }
  0x1a   : > { %s178_s10 = sand.u32 1, %s854_s17   ;;  %s615_s11 = sshll.u32 %s858_s18, 4 }
  0x1b   : > { %s589_s12 = sshll.u32 %s178_s10, 4  ;;  %s1109_s0 = sld [smem:[#allocation13_spill]] }
  0x1c   : > { %s182_s24 = scalar_lea.vmem [#allocation2], %s589_s12  ;;  %p971_p9 = pnand %p653_p3, %p39_p5 }
  0x1d   : > { %s190_s25 = sshll.u32 %s182_s24, 4  ;;  %s209_s7 = scalar_lea.hbm %s1094_s1, %s615_s11  ;;  %s191_s25 = int_to_ptr.vmem [resolvable:$true] %s190_s25 }
  0x1e   : > { %s204_s30 = scalar_lea.vmem [#allocation5], %s589_s12  ;;  %s210_s13 = sshll.u32 %s209_s7, 4  ;;  %s211_s13 = int_to_ptr.hbm [resolvable:$true] %s210_s13 }
  0x1f   : > { %s978_s5 = sshll.u32 %s204_s30, 4  ;;  %s179_s14 = scalar_lea.sflag [#allocation3], %s178_s10  ;;  %s213_s5 = int_to_ptr.vmem [resolvable:$true] %s978_s5 }
  0x20   : > { %p728_p10 = pneg %p971_p9 }
  0x21   : > { %s187_s20 = scalar_lea.hbm %s1109_s0, %s615_s11  ;;  %s731_s6 = scalar_lea.hbm %s1109_s0, 32 }
  0x22   : > { %s188_s23 = sshll.u32 %s187_s20, 4  ;;  %s189_s23 = int_to_ptr.hbm [resolvable:$true] %s188_s23 }
  0x23   : > { %s724_s20 = sshra.s32 %s189_s23, 4  ;;  %s725_s20 = int_to_ptr.hbm [resolvable:$true] %s724_s20 }
  0x24   : > { %s726_s24 = scalar_lea.hbm %s725_s20, 16  ;;  %p732_p0 = scmp.lt.s32.totalorder %s725_s20, %s1109_s0 }
  0x25   : > { %p727_p2 = scmp.ne.s32.totalorder %s725_s20, %s726_s24  ;;  %p733_p3 = scmp.lt.s32.totalorder %s731_s6, %s726_s24 }
  0x27   : > { %p729_p12 = pnand %p728_p10, %p727_p2  ;;  %p734_p5 = por %p733_p3, %p732_p0 }
  0x29   : > { %p730_p13 = pneg %p729_p12 }
  0x2b   : > { %p735_p11 = pnand %p734_p5, %p730_p13 }
  0x2d   : > { %738 = shalt.err (!%p735_p11)
}
  0x2e   : > { %s1111_s30 = smov 8   ;;  %s1112_s10 = smov 128  }
  0x2f   : > { %644 = dma.hbm_to_vmem [thread:$0]  (!%p971_p9), %s189_s23, 256, %s191_s25, %s179_s14, %s1112_s10, %s1112_s10, %s1111_s30  }
  0x30   : > { %s200_s2 = sand.u32 1, %s858_s18   ;;  %s754_s28 = sshra.s32 %s211_s13, 4  ;;  %s755_s28 = int_to_ptr.hbm [resolvable:$true] %s754_s28 }
  0x31   : > { %s201_s7 = scalar_lea.sflag [#allocation6], %s200_s2  ;;  %s756_s20 = scalar_lea.hbm %s755_s28, 16 }
  0x32   : > { %p757_p2 = scmp.ne.s32.totalorder %s755_s28, %s756_s20  ;;  %s761_s11 = scalar_lea.hbm %s1094_s1, 32 }
  0x33   : > { %p762_p13 = scmp.lt.s32.totalorder %s755_s28, %s1094_s1  ;;  %p763_p0 = scmp.lt.s32.totalorder %s761_s11, %s756_s20 }
  0x34   : > { %p759_p11 = pnand %p757_p2, %p728_p10 }
  0x35   : > { %p764_p3 = por %p763_p0, %p762_p13 }
  0x36   : > { %p760_p12 = pneg %p759_p11 }
  0x38   : > { %p765_p5 = pnand %p764_p3, %p760_p12 }
  0x3a   : > { %768 = shalt.err (!%p765_p5)
}
  0x3b   : > { %647 = dma.hbm_to_vmem [thread:$0]  (!%p971_p9), %s211_s13, 256, %s213_s5, %s201_s7, %s1112_s10, %s1112_s10, %s1111_s30  }
  0x3c   : > { %224 = sbr.rel (%p933_p8) target bundleno = 484 (0x1e4), region = 36  ;;  %s1015_s23 = sand.u32 (!%p933_p8), 1, %s850_s16  }
  0x3d   : > { %s1018_s0 = sshll.u32 (!%p933_p8), %s1015_s23, 4  ;;  %s227_s25 = scalar_lea.sflag (!%p933_p8), [#allocation3], %s1015_s23 }
  0x3e   : > { %s230_s14 = scalar_lea.vmem (!%p933_p8), [#allocation2], %s1018_s0 }
  0x41   : > { %829 = dma.done.wait (%p920_p4), %s227_s25, 256  }
  0x42   : > { %831 = vsyncadd (%p920_p4), %s227_s25, 4294967040  ;;  %s236_s26 = sand.u32 1, %s911_s19   ;;  %s240_s27 = scalar_lea.vmem [#allocation5], %s1018_s0 }
  0x43   : > { %s237_s5 = scalar_lea.sflag [#allocation6], %s236_s26 }
  0x44   : > { %833 = dma.done.wait (%p920_p4), %s237_s5, 256  }
  0x45   : > { %835 = vsyncadd (%p920_p4), %s237_s5, 4294967040 }
  0x46   : > { %837 = dma.done.wait (%p44_p1), [#allocation6], 3456  }
  0x47   : > { %839 = vsyncadd (%p44_p1), [#allocation6], 4294963840  ;;  %v1036_v0 = vld [vmem:[%s230_s14 + $0x8] sm:$0xff]  ;;  %v1038_v1 = vld [vmem:[%s230_s14] sm:$0xff]  ;;  %vm280_vm0 = vcmask 130048   ;;  %vm356_vm1 = vcmask 588800  }
  0x48   : > { %301 = vmatpush.msra.mxu0 %v1036_v0  ;;  %v278_v2 = vld [vmem:[%s240_s27] sm:$0xff]  ;;  %v355_v3 = vld [vmem:[#allocation7 + $0x88] sm:$0xff]  ;;  %v344_v6 = vld [vmem:[#allocation7 + $0x38] sm:$0xff]  ;;  %s617_s30 = sshll.u32 %s911_s19, 4  ;;  %s275_s28 = scalar_lea.vmem [#allocation8], %s1018_s0 }
  0x49   : > { %v345_v4 = vld [vmem:[#allocation7 + $0x40] sm:$0xff]  ;;  %370 = vmatpush.msra.mxu2 %v355_v3  ;;  %v353_v7 = vld [vmem:[#allocation7 + $0x78] sm:$0xff]  ;;  %v343_v8 = vld [vmem:[#allocation7 + $0x30] sm:$0xff]  ;;  %s476_s7 = scalar_lea.hbm %s1097_s4, %s617_s30  ;;  %s477_s20 = sshll.u32 %s275_s28, 4  ;;  %s478_s20 = int_to_ptr.vmem [resolvable:$true] %s477_s20 }
  0x4a   : > { %399 = vmatpush.msra.mxu3 %v345_v4  ;;  %v354_v5 = vld [vmem:[#allocation7 + $0x80] sm:$0xff]  ;;  %302 = vmatpush.msra.mxu0 %v1038_v1  ;;  %v352_v9 = vld [vmem:[#allocation7 + $0x70] sm:$0xff]  ;;  %v342_v10 = vld [vmem:[#allocation7 + $0x28] sm:$0xff]  ;;  %s479_s24 = sshll.u32 %s476_s7, 4  ;;  %s465_s19 = scalar_lea.sflag [#allocation4], %s1015_s23  ;;  %s480_s24 = int_to_ptr.hbm [resolvable:$true] %s479_s24 }
  0x4b   : > { %600 = vmatmul.msk.f32.vlgmr.msra.gmra.mxu0 %vm280_vm0, %v278_v2  ;;  %371 = vmatpush.msra.mxu2 %v354_v5  ;;  %v351_v11 = vld [vmem:[#allocation7 + $0x68] sm:$0xff]  ;;  %v341_v12 = vld [vmem:[#allocation7 + $0x20] sm:$0xff]  ;;  %v340_v15 = vld [vmem:[#allocation7 + $0x18] sm:$0xff]  ;;  %s798_s6 = sshra.s32 %s480_s24, 4  ;;  %s804_s25 = scalar_lea.hbm %s1097_s4, 32  ;;  %s799_s6 = int_to_ptr.hbm [resolvable:$true] %s798_s6 }
  0x4c   : > { %400 = vmatpush.msra.mxu3 %v344_v6  ;;  %v279_v13 = vld [vmem:[%s240_s27 + $0x8] sm:$0xff]  ;;  %v350_v14 = vld [vmem:[#allocation7 + $0x60] sm:$0xff]  ;;  %v339_v17 = vld [vmem:[#allocation7 + $0x10] sm:$0xff]  ;;  %s800_s11 = scalar_lea.hbm %s799_s6, 16  ;;  %p805_p9 = scmp.lt.s32.totalorder %s799_s6, %s1097_s4 }
  0x4d   : > { %372 = vmatpush.msra.mxu2 %v353_v7  ;;  %v349_v16 = vld [vmem:[#allocation7 + $0x58] sm:$0xff]  ;;  %v348_v18 = vld [vmem:[#allocation7 + $0x50] sm:$0xff]  ;;  %v338_v19 = vld [vmem:[#allocation7 + $0x8] sm:$0xff]  ;;  %p801_p1 = scmp.ne.s32.totalorder %s799_s6, %s800_s11  ;;  %p806_p10 = scmp.lt.s32.totalorder %s804_s25, %s800_s11 }
  0x4e   : > { %401 = vmatpush.msra.mxu3 %v343_v8  ;;  %v347_v20 = vld [vmem:[#allocation7 + $0x48] sm:$0xff]  ;;  %v337_v21 = vld [vmem:[#allocation7] sm:$0xff]  ;;  %v424_v22 = vld [vmem:[#allocation7 + $0xd0] sm:$0xff] }
  0x4f   : > { %373 = vmatpush.msra.mxu2 %v352_v9  ;;  %v423_v23 = vld [vmem:[#allocation7 + $0xc8] sm:$0xff]  ;;  %438 = vmatpush.msrb.mxu0 %v424_v22  ;;  %v422_v24 = vld [vmem:[#allocation7 + $0xc0] sm:$0xff]  ;;  %v421_v25 = vld [vmem:[#allocation7 + $0xb8] sm:$0xff]  ;;  %p802_p4 = pnand %p801_p1, %p960_p7  ;;  %p807_p2 = por %p806_p10, %p805_p9 }
  0x50   : > { %402 = vmatpush.msra.mxu3 %v342_v10  ;;  %v420_v28 = vld [vmem:[#allocation7 + $0xb0] sm:$0xff]  ;;  %v419_v29 = vld [vmem:[#allocation7 + $0xa8] sm:$0xff]  ;;  %v418_v30 = vld [vmem:[#allocation7 + $0xa0] sm:$0xff] }
  0x51   : > { %374 = vmatpush.msra.mxu2 %v351_v11  ;;  %439 = vmatpush.msrb.mxu0 %v423_v23  ;;  %v417_v31 = vld [vmem:[#allocation7 + $0x98] sm:$0xff]  ;;  %v416_v32 = vld [vmem:[#allocation7 + $0x90] sm:$0xff]  ;;  %v693_v42 = vld [vmem:[%s1096_s3] ss:$0 sm:$0xff]  ;;  %p803_p8 = pneg %p802_p4 }
  0x52   : > { %403 = vmatpush.msra.mxu3 %v341_v12 }
  0x53   : > { %601 = vmatmul.msk.f32.gmra.mxu0 %vm280_vm0, %v279_v13  ;;  %375 = vmatpush.msra.mxu2 %v350_v14  ;;  %p808_p11 = pnand %p807_p2, %p803_p8 }
  0x54   : > { %404 = vmatpush.msra.mxu3 %v340_v15  ;;  %440 = vmatpush.msrb.mxu0 %v422_v24 }
  0x55   : > { %376 = vmatpush.msra.mxu2 %v349_v16 }
  0x56   : > { %405 = vmatpush.msra.mxu3 %v339_v17  ;;  %441 = vmatpush.msrb.mxu0 %v421_v25 }
  0x57   : > { %377 = vmatpush.msra.mxu2 %v348_v18 }
  0x58   : > { %406 = vmatpush.msra.mxu3 %v338_v19  ;;  %442 = vmatpush.msrb.mxu0 %v420_v28 }
  0x59   : > { %378 = vmatpush.msra.mxu2 %v347_v20 }
  0x5a   : > { %407 = vmatpush.msra.mxu3 %v337_v21  ;;  %443 = vmatpush.msrb.mxu0 %v419_v29 }
  0x5b   : > { %606 = vmatmul.msk.f32.vlgmr.msra.gmra.mxu3 %vm356_vm1, %v1038_v1 }
  0x5c   : > { %444 = vmatpush.msrb.mxu0 %v418_v30 }
  0x5e   : > { %445 = vmatpush.msrb.mxu0 %v417_v31 }
  0x60   : > { %446 = vmatpush.msrb.mxu0 %v416_v32 }
  0x63   : > { %607 = vmatmul.msk.f32.gmra.mxu3 %vm356_vm1, %v1036_v0 }
  0xc8   : > { %v304_v26 = vpop.f32.mrf.mxu0 }
  0xc9   : > { %604 = vmatmul.msk.f32.vlgmr.msra.gmra.mxu2 %vm356_vm1, %v304_v26 }
  0xd0   : > { %v307_v27 = vpop.f32.mrf.mxu0 }
  0xd1   : > { %324 = vmatpush.msra.mxu1 %v307_v27  ;;  %605 = vmatmul.msk.f32.gmra.mxu2 %vm356_vm1, %v307_v27 }
  0xd3   : > { %325 = vmatpush.msra.mxu1 %v304_v26 }
  0xd4   : > { %602 = vmatmul.msk.f32.vlgmr.msra.gmra.mxu1 %vm280_vm0, %v278_v2 }
  0xd5   : > { %618 = vmatpush.msrb.mxu1 %v424_v22 }
  0xd7   : > { %619 = vmatpush.msrb.mxu1 %v423_v23 }
  0xd9   : > { %620 = vmatpush.msrb.mxu1 %v422_v24 }
  0xdb   : > { %621 = vmatpush.msrb.mxu1 %v421_v25 }
  0xdc   : > { %603 = vmatmul.msk.f32.gmra.mxu1 %vm280_vm0, %v279_v13 }
  0xdd   : > { %622 = vmatpush.msrb.mxu1 %v420_v28 }
  0xde   : > { %v409_v40 = vpop.f32.mrf.mxu3 }
  0xdf   : > { %623 = vmatpush.msrb.mxu1 %v419_v29 }
  0xe1   : > { %624 = vmatpush.msrb.mxu1 %v418_v30 }
  0xe3   : > { %625 = vmatpush.msrb.mxu1 %v417_v31 }
  0xe5   : > { %626 = vmatpush.msrb.mxu1 %v416_v32 }
  0xe6   : > { %v412_v47 = vpop.f32.mrf.mxu3 }
 0x14c   : > { %v380_v39 = vpop.f32.mrf.mxu2 }
 0x14d   : > { %v410_v41 = vadd.f32 %v409_v40, %v380_v39 }
 0x151   : > { %v327_v33 = vpop.f32.mrf.mxu1 }
 0x152   : > { %v333_v34 = vmul.f32 2.0, %v327_v33 }
 0x154   : > { %v335_v35 = vsub.f32 %v333_v34, %v1038_v1  ;;  %v383_v46 = vpop.f32.mrf.mxu2 }
 0x155   : > { %v413_v48 = vadd.f32 %v412_v47, %v383_v46 }
 0x156   : > { %608 = vmatmul.msk.f32.vlgmr.msrb.gmra.mxu0 %vm356_vm1, %v335_v35 }
 0x159   : > { %v330_v36 = vpop.f32.mrf.mxu1 }
 0x15a   : > { %v334_v37 = vmul.f32 2.0, %v330_v36 }
 0x15c   : > { %v336_v38 = vsub.f32 %v334_v37, %v1036_v0 }
 0x15e   : > { %609 = vmatmul.msk.f32.vlgmr.msrb.gmra.mxu1 %vm356_vm1, %v336_v38 }
 0x1d3   : > { %v448_v43 = vpop.f32.mrf.mxu0 }
 0x1d4   : > { %v454_v44 = vadd.f32 %v448_v43, %v410_v41 }
 0x1d6   : > { %v460_v45 = vadd.f32 %v693_v42, %v454_v44 }
 0x1d8   : > { %462 = vst [vmem:[%s275_s28] sm:$0xff] %v460_v45 }
 0x1db   : > { %v451_v49 = vpop.f32.mrf.mxu1 }
 0x1dc   : > { %v455_v50 = vadd.f32 %v451_v49, %v413_v48 }
 0x1de   : > { %v461_v51 = vadd.f32 %v693_v42, %v455_v50 }
 0x1e0   : > { %463 = vst [vmem:[%s275_s28 + $0x8] sm:$0xff] %v461_v51 }
 0x1e1   : > { %811 = shalt.err (!%p808_p11)
}
 0x1e2   : > { %s863_s23 = smov 128   ;;  %s864_s5 = smov 8  }
 0x1e3   : > { %635 = dma.vmem_to_hbm [thread:$0]  (%p960_p7), %s478_s20, 256, %s480_s24, %s465_s19, %s863_s23, %s863_s23, %s864_s5  }
 0x1e4 PF: > { %s494_s27 = sand.u32 1, %s846_s15   ;;  %p1113_p12 = scmp.ge.s32.totalorder %s858_s18, 2 }
 0x1e5   : > { %s495_s21 = scalar_lea.sflag [#allocation4], %s494_s27 }
 0x1e6   : > { %p649_p13 = pnand %p1113_p12, %p925_p6 }
 0x1e8   : > { %p650_p0 = pneg %p649_p13 }
 0x1ea   : > { %841 = dma.done.wait (%p650_p0), %s495_s21, 256  }
 0x1eb   : > { %843 = vsyncadd (%p650_p0), %s495_s21, 4294967040  ;;  %p20_p3 = scmp.ge.s32.totalorder %s943_s29, 4   ;;  %s1114_s15 = smov %s850_s16 }
 0x1ec   : > { %s1115_s16 = smov %s854_s17  ;;  %s1116_s17 = smov %s956_s8 }
 0x1ed   : > { %s1117_s18 = smov %s943_s29  ;;  %22 = sbr.rel (!%p20_p3) target bundleno = 10 (0xa), region = 100 }
 0x1f2   :  { %501 = vsyncpa [#allocation3], 1 }
 0x1f3   :  { %503 = vsyncpa [#allocation3 + $0x1], 1 }
 0x1f4   :  { %504 = vsyncpa [#allocation6], 1 }
 0x1f5   :  { %506 = vsyncpa [#allocation6 + $0x1], 1 }
 0x1f6   :  { %507 = vsyncpa [#allocation4], 1 }
 0x1f7   :  { %509 = vsyncpa [#allocation4 + $0x1], 1 }

</bundles_post_ra>
